<compile_context>
chip_gen: v7x
topology: tpu7x:2x2x1
jax: 0.10.0
libtpu: 0.0.40
codegen_flags: <defaults>
</compile_context>

<pallas_src>
import jax
import jax.numpy as jnp
from jax.experimental import pallas as pl
from jax.experimental.pallas import tpu as pltpu


# ------------- Kernel 1: fused patch-embed + mask predictor -----------------
def _fused_mask_kernel(q_ref, wT_ref, bT_ref, pT_ref, mask_ref):
    # q_ref:    (1, Q, Cm)   point-query embeddings (per batch)
    # wT_ref:   (Cm, K)      folded (normalization-absorbed) patch weights, Cm-major
    # bT_ref:   (Cm, 1)      folded bias (broadcast along the P lane dim)
    # pT_ref:   (1, K, Pt)   raw patch pixels, K-major / P-minor (lane dense)
    # mask_ref: (1, Q, Pt)   mask logits for this P tile (lane dense output)
    #
    # mask-feature tile, directly in (Cm, Pt) layout: contraction dims are the
    # minor dim of the LHS and the major dim of the RHS for BOTH matmuls, so no
    # XLU transpose is ever needed.
    mf_t = (
        jnp.dot(wT_ref[...], pT_ref[0], preferred_element_type=jnp.float32)
        + bT_ref[...]
    )                                                             # (Cm, Pt)
    mask_ref[0] = jnp.dot(q_ref[0], mf_t, preferred_element_type=jnp.float32)


def _pick_p_tile(P):
    for t in (512, 256, 128):
        if P % t == 0:
            return t
    return P


def fused_mask_predictor(q_emb, wT_fold, bT_fold, patches_T):
    """pred_masks[b, q, p] = q_emb[b,q,:] . (W_fold^T @ patches_T[b,:,p] + b_fold)."""
    B, Q, Cm = q_emb.shape
    _, K, P = patches_T.shape
    p_tile = _pick_p_tile(P)
    # TODO(synk): if K grows large at production sizes, add a K grid axis
    # ("arbitrary") with an f32 VMEM accumulator.
    return pl.pallas_call(
        _fused_mask_kernel,
        out_shape=jax.ShapeDtypeStruct((B, Q, P), jnp.float32),
        grid=(B, P // p_tile),
        in_specs=[
            pl.BlockSpec((1, Q, Cm), lambda b, p: (b, 0, 0)),
            pl.BlockSpec((Cm, K), lambda b, p: (0, 0)),       # resident weights
            pl.BlockSpec((Cm, 1), lambda b, p: (0, 0)),       # resident bias
            pl.BlockSpec((1, K, p_tile), lambda b, p: (b, 0, p)),
        ],
        out_specs=pl.BlockSpec((1, Q, p_tile), lambda b, p: (b, 0, p)),
        compiler_params=pltpu.CompilerParams(
            dimension_semantics=("parallel", "parallel"),
            vmem_limit_bytes=32 * 1024 * 1024,
        ),
    )(q_emb, wT_fold, bT_fold, patches_T)


# -------------- Kernel 2: batched bilinear mask upsampling ------------------
def _bilinear_kernel(wr_ref, wct_ref, m_ref, out_ref):
    # wr_ref:  (H_out, h)      row-interpolation matrix (resident across steps)
    # wct_ref: (w, W_out)      column-interpolation matrix, pre-transposed
    # m_ref:   (T*h, w)        T masks stacked along rows
    # out_ref: (T, H_out, W_out)
    T = out_ref.shape[0]
    h = wr_ref.shape[1]
    # Column pass for all T masks as ONE lane-dense matmul.
    cols = jnp.dot(m_ref[...], wct_ref[...], preferred_element_type=jnp.float32)
    wr = wr_ref[...]
    # Row pass per mask (static unrolled loop; slices are sublane-aligned).
    for t in range(T):
        out_ref[t] = jnp.dot(
            wr, cols[t * h:(t + 1) * h, :], preferred_element_type=jnp.float32
        )


def bilinear_upsample(masks, w_row, w_col_t, *, masks_per_step=8):
    N, h, w = masks.shape
    H_out = w_row.shape[0]
    W_out = w_col_t.shape[1]
    T = max(1, min(masks_per_step, N))
    while N % T:
        T -= 1
    masks2d = masks.reshape(N * h, w)                 # free reshape, no copy
    out = pl.pallas_call(
        _bilinear_kernel,
        out_shape=jax.ShapeDtypeStruct((N, H_out, W_out), jnp.float32),
        grid=(N // T,),
        in_specs=[
            # constant index maps -> interpolation matrices stay VMEM-resident
            pl.BlockSpec((H_out, h), lambda n: (0, 0)),
            pl.BlockSpec((w, W_out), lambda n: (0, 0)),
            pl.BlockSpec((T * h, w), lambda n: (n, 0)),
        ],
        out_specs=pl.BlockSpec((T, H_out, W_out), lambda n: (n, 0, 0)),
        compiler_params=pltpu.CompilerParams(
            dimension_semantics=("parallel",),
            vmem_limit_bytes=32 * 1024 * 1024,
        ),
    )(w_row, w_col_t, masks2d)
    return out


# ------------------------------ plain-JAX glue -------------------------------
def bilinear_matrix(out_size, in_size):
    """Row-interpolation matrix matching F.interpolate(bilinear, align_corners=False)."""
    i = jnp.arange(out_size, dtype=jnp.float32)
    src = (i + 0.5) * (float(in_size) / float(out_size)) - 0.5
    src = jnp.clip(src, 0.0, float(in_size) - 1.0)
    x0 = jnp.floor(src)
    frac = src - x0
    x0i = x0.astype(jnp.int32)
    x1i = jnp.minimum(x0i + 1, in_size - 1)
    W = jnp.zeros((out_size, in_size), jnp.float32)
    W = W.at[jnp.arange(out_size), x0i].add(1.0 - frac)
    W = W.at[jnp.arange(out_size), x1i].add(frac)
    return W


def prepare_points(pts_per_side, scaled_sizes):
    """Mirrors UniOVSeg_S1.prepare_points."""
    px, py = pts_per_side
    ox = 1.0 / (2 * px)
    oy = 1.0 / (2 * py)
    xs = jnp.linspace(ox, 1.0 - ox, px)
    ys = jnp.linspace(oy, 1.0 - oy, py)
    gx, gy = jnp.meshgrid(xs, ys, indexing="xy")
    grid = jnp.stack([gx, gy], axis=-1).reshape(-1, 2)          # (Q, 2)
    pts = grid[None, :, :] * scaled_sizes[:, None, :]           # (B, Q, 2)
    pts = jnp.concatenate([pts - 2.0, pts + 2.0], axis=-1)      # (B, Q, 4)
    return pts


def uni_ovseg_s1_forward(images, params, *, input_size, patch, pts_per_side):
    B, C, H, W = images.shape
    h, w = H // patch, W // patch
    P = h * w
    K = C * patch * patch

    # ---- fold (x - mean)/std exactly into the patch-embed weights/bias ------
    # mf = ((x - mean)/std) @ Wp + bp  ==  x @ (Wp * 1/std) + (bp - (mean/std) @ Wp)
    inv_std = 1.0 / params["pixel_std"]                           # (C,)
    scale_k = jnp.repeat(inv_std, patch * patch)                  # (K,) k=(c,di,dj)
    shift_k = jnp.repeat(params["pixel_mean"] * inv_std, patch * patch)
    w_fold = params["w_patch"] * scale_k[:, None]                 # (K, Cm)
    b_fold = params["b_patch"] - shift_k @ params["w_patch"]      # (1, Cm)
    wT_fold = jnp.transpose(w_fold)                               # (Cm, K)
    bT_fold = jnp.transpose(b_fold)                               # (Cm, 1)

    # ---- patchify RAW image into K-major / P-minor layout (B, K, P) --------
    # (lane dim = P so the fused kernel needs no in-kernel transpose)
    patches_T = (
        images.reshape(B, C, h, patch, w, patch)
        .transpose(0, 1, 3, 5, 2, 4)
        .reshape(B, K, P)
    )

    # sizes / scaled_sizes (preprosses_image glue; width=height=input_size)
    sizes = jnp.tile(
        jnp.array([[input_size[0] - 1.0, input_size[1] - 1.0]], jnp.float32), (B, 1)
    )
    aspect = (input_size[0] - 1.0) / jnp.max(sizes, axis=-1, keepdims=True)
    scaled_sizes = sizes * aspect

    # point prompts -> query embeddings (tiny: B*Q*Cm), iou head on VPU path
    points = prepare_points(pts_per_side, scaled_sizes)           # (B, Q, 4)
    Q = points.shape[1]
    q_emb = points @ params["w_pt"] + params["b_pt"]              # (B, Q, Cm)
    iou = jax.nn.sigmoid(
        jnp.einsum("bqc,c->bq", q_emb, params["w_iou"][:, 0]) + params["b_iou"][0, 0]
    )                                                             # (B, Q)

    # fused patch-embed + mask predictor — Pallas
    pred_masks = fused_mask_predictor(q_emb, wT_fold, bT_fold, patches_T)  # (B,Q,P)

    # bilinear upsample to input_size — Pallas (batched, lane-dense)
    w_row = bilinear_matrix(input_size[0], h)
    w_col_t = bilinear_matrix(input_size[1], w).T
    masks_up = bilinear_upsample(pred_masks.reshape(B * Q, h, w), w_row, w_col_t)
    masks_up = masks_up.reshape(B, Q, input_size[0], input_size[1])

    # per-image keep by iou threshold (NMS / sem_seg_postprocess are external)
    keep = iou >= 0.65
    return masks_up, iou, keep


if __name__ == "__main__":
    key = jax.random.PRNGKey(0)
    B, C = 2, 3
    H = W = 32                     # input_size = (32, 32)
    patch = 4
    Cm = 128                       # mask-embedding width (MXU-friendly granule)
    pts_per_side = (4, 4)          # Q = 16 point prompts

    k_img, k_wpatch, k_bpatch, k_wpt, k_bpt, k_wiou = jax.random.split(key, 6)
    images = jax.random.uniform(k_img, (B, C, H, W), jnp.float32, 0.0, 255.0)

    K = C * patch * patch
    params = {
        "pixel_mean": jnp.array([123.675, 116.28, 103.53], jnp.float32),
        "pixel_std": jnp.array([58.395, 57.12, 57.375], jnp.float32),
        "w_patch": jax.random.normal(k_wpatch, (K, Cm), jnp.float32) * 0.05,
        "b_patch": jax.random.normal(k_bpatch, (1, Cm), jnp.float32) * 0.01,
        "w_pt": jax.random.normal(k_wpt, (4, Cm), jnp.float32) * 0.05,
        "b_pt": jax.random.normal(k_bpt, (1, Cm), jnp.float32) * 0.01,
        "w_iou": jax.random.normal(k_wiou, (Cm, 1), jnp.float32) * 0.05,
        "b_iou": jnp.zeros((1, 1), jnp.float32),
    }

    masks_up, iou, keep = uni_ovseg_s1_forward(
        images, params, input_size=(H, W), patch=patch, pts_per_side=pts_per_side
    )
    jax.block_until_ready((masks_up, iou, keep))
    assert masks_up.shape == (B, 16, H, W)
    assert iou.shape == (B, 16)
    assert keep.shape == (B, 16)
    print("KERNEL_OK")
</pallas_src>

<mosaic_0001>
module attributes {stable_mosaic.version = 11 : i64} {
  func.func @_fused_mask_kernel(%arg0: i32, %arg1: i32, %arg2: memref<1x16x128xf32, #tpu.memory_space<vmem>>, %arg3: memref<128x48xf32, #tpu.memory_space<vmem>>, %arg4: memref<128x1xf32, #tpu.memory_space<vmem>>, %arg5: memref<1x48x64xf32, #tpu.memory_space<vmem>>, %arg6: memref<1x16x64xf32, #tpu.memory_space<vmem>>) attributes {dimension_semantics = [#tpu.dimension_semantics<parallel>, #tpu.dimension_semantics<parallel>], iteration_bounds = array<i64: 2, 1>, scalar_prefetch = 0 : i64, scratch_operands = 0 : i64, tpu.core_type = #tpu.core_type<tc>, window_params = [{transform_indices = @transform_0, window_bounds = array<i64: 1, 16, 128>}, {pipeline_mode = #tpu.pipeline_mode<synchronous>, transform_indices = @transform_1, window_bounds = array<i64: 128, 48>}, {pipeline_mode = #tpu.pipeline_mode<synchronous>, transform_indices = @transform_2, window_bounds = array<i64: 128, 1>}, {transform_indices = @transform_3, window_bounds = array<i64: 1, 48, 64>}, {transform_indices = @transform_4, window_bounds = array<i64: 1, 16, 64>}]} {
    %c0 = arith.constant 0 : index
    %c0_0 = arith.constant 0 : index
    %0 = vector.load %arg3[%c0, %c0_0] : memref<128x48xf32, #tpu.memory_space<vmem>>, vector<128x48xf32>
    %c0_1 = arith.constant 0 : index
    %c0_2 = arith.constant 0 : index
    %c0_3 = arith.constant 0 : index
    %1 = vector.load %arg5[%c0_1, %c0_2, %c0_3] : memref<1x48x64xf32, #tpu.memory_space<vmem>>, vector<1x48x64xf32>
    %2 = vector.shape_cast %1 : vector<1x48x64xf32> to vector<48x64xf32>
    %cst = arith.constant dense<0.000000e+00> : vector<128x64xf32>
    %3 = tpu.matmul %0, %2, %cst {dimension_numbers = #tpu.dot_dimension_numbers<[1], [0], [0], [1], [0, 0, 1, 1], [], []>} : vector<128x48xf32>, vector<48x64xf32>, vector<128x64xf32> -> vector<128x64xf32>
    %c0_4 = arith.constant 0 : index
    %c0_5 = arith.constant 0 : index
    %4 = vector.load %arg4[%c0_4, %c0_5] : memref<128x1xf32, #tpu.memory_space<vmem>>, vector<128x1xf32>
    %5 = vector.broadcast %4 : vector<128x1xf32> to vector<128x64xf32>
    %6 = arith.addf %3, %5 : vector<128x64xf32>
    %c0_6 = arith.constant 0 : index
    %c0_7 = arith.constant 0 : index
    %c0_8 = arith.constant 0 : index
    %7 = vector.load %arg2[%c0_6, %c0_7, %c0_8] : memref<1x16x128xf32, #tpu.memory_space<vmem>>, vector<1x16x128xf32>
    %8 = vector.shape_cast %7 : vector<1x16x128xf32> to vector<16x128xf32>
    %cst_9 = arith.constant dense<0.000000e+00> : vector<16x64xf32>
    %9 = tpu.matmul %8, %6, %cst_9 {dimension_numbers = #tpu.dot_dimension_numbers<[1], [0], [0], [1], [0, 0, 1, 1], [], []>} : vector<16x128xf32>, vector<128x64xf32>, vector<16x64xf32> -> vector<16x64xf32>
    %c0_10 = arith.constant 0 : index
    %c0_11 = arith.constant 0 : index
    %c0_12 = arith.constant 0 : index
    %10 = vector.load %arg6[%c0_10, %c0_11, %c0_12] : memref<1x16x64xf32, #tpu.memory_space<vmem>>, vector<1x16x64xf32>
    %11 = vector.shape_cast %10 : vector<1x16x64xf32> to vector<16x64xf32>
    %12 = vector.shape_cast %9 : vector<16x64xf32> to vector<1x16x64xf32>
    tpu.vector_store %arg6[%c0_10, %c0_11, %c0_12], %12 {strides = array<i32>} : memref<1x16x64xf32, #tpu.memory_space<vmem>>, vector<1x16x64xf32>,
    return
  }
  func.func @transform_0(%arg0: i32, %arg1: i32) -> (i32, i32, i32) {
    %c0_i32 = arith.constant 0 : i32
    %c0_i32_0 = arith.constant 0 : i32
    %c0_i32_1 = arith.constant 0 : i32
    return %arg0, %c0_i32, %c0_i32_0 : i32, i32, i32
  }
  func.func @transform_1(%arg0: i32, %arg1: i32) -> (i32, i32) {
    %c0_i32 = arith.constant 0 : i32
    %c0_i32_0 = arith.constant 0 : i32
    %c0_i32_1 = arith.constant 0 : i32
    return %c0_i32, %c0_i32_0 : i32, i32
  }
  func.func @transform_2(%arg0: i32, %arg1: i32) -> (i32, i32) {
    %c0_i32 = arith.constant 0 : i32
    %c0_i32_0 = arith.constant 0 : i32
    %c0_i32_1 = arith.constant 0 : i32
    return %c0_i32, %c0_i32_0 : i32, i32
  }
  func.func @transform_3(%arg0: i32, %arg1: i32) -> (i32, i32, i32) {
    %c0_i32 = arith.constant 0 : i32
    %c0_i32_0 = arith.constant 0 : i32
    return %arg0, %c0_i32, %arg1 : i32, i32, i32
  }
  func.func @transform_4(%arg0: i32, %arg1: i32) -> (i32, i32, i32) {
    %c0_i32 = arith.constant 0 : i32
    %c0_i32_0 = arith.constant 0 : i32
    return %arg0, %c0_i32, %arg1 : i32, i32, i32
  }
}

</mosaic_0001>

<bundles_post_ra>
// kernel: tpu_custom_call.1
= control target key start
LH: loop header
LB: loop body
LE: loop exit
PB: predicated region body
PF: predicated region fallthrough
CT: control target
= control target key end

     0   :  { %9 = vsyncpa [#allocation3], 0  ;;  %s1333_s0 = inlined_call_operand.vmem [shape: f32[2,16,128], index: 0, kind: input, shape index: {}]   ;;  %s1334_s1 = inlined_call_operand.vmem [shape: f32[128,48], index: 1, kind: input, shape index: {}]   ;;  %s1335_s2 = inlined_call_operand.vmem [shape: f32[128,1], index: 2, kind: input, shape index: {}]   ;;  %s1336_s3 = inlined_call_operand.vmem [shape: f32[2,48,64], index: 3, kind: input, shape index: {}]   ;;  %s1337_s4 = inlined_call_operand.hbm [shape: f32[2,16,64], index: 4, kind: output, shape index: {}]  }
   0x1   :  { %11 = vsyncpa [#allocation3 + $0x1], 0  ;;  %s1095_s15 = smov 0   ;;  %s1097_s16 = smov 0  }
   0x2   :  { %s1099_s17 = smov 0   ;;  %s1101_s18 = smov 0  }
   0x3   :  { %s1103_s19 = smov 0   ;;  %s1105_s20 = smov 0  }
   0x4 LB: > { %s738_s21 = sadd.s32 4294967295, %s1064_s20   ;;  %s739_s22 = sadd.s32 4294967294, %s1064_s20   ;;  %s1064_s20 = sphi %s1105_s20, %s17_s20   ;;  %s1060_s19 = sphi %s1103_s19, %s1344_s19   ;;  %s1056_s18 = sphi %s1101_s18, %s1343_s18   ;;  %s1052_s17 = sphi %s1099_s17, %s1342_s17   ;;  %s1048_s16 = sphi %s1097_s16, %s1341_s16   ;;  %s1044_s15 = sphi %s1095_s15, %s1340_s15  }
   0x5   : > { %s29_s23 = sadd.s32 1, %s1060_s19  ;;  %s134_s24 = sadd.s32 1, %s1052_s17 }
   0x6   : > { %p31_p0 = scmp.ge.s32.totalorder %s29_s23, 2  ;;  %p144_p1 = scmp.ne.s32.totalorder %s1052_s17, %s1048_s16 }
   0x7   : > { %p145_p2 = scmp.eq.s32.totalorder %s738_s21, 1  ;;  %p150_p3 = scmp.ne.s32.totalorder %s1048_s16, %s1044_s15 }
   0x8   : > { %s1346_s23 = smov (%p31_p0, %s29_s23), 0  ;;  %p151_p5 = scmp.eq.s32.totalorder %s739_s22, 1 }
   0x9   : > { %p1135_p4 = por %p145_p2, %p144_p1  ;;  %s129_s26 = ssub.s32 %s1060_s19, %s1346_s23 }
   0xa   : > { %p742_p6 = scmp.ge.s32.totalorder %s1064_s20, 1  ;;  %p132_p7 = scmp.eq.s32.totalorder %s129_s26, 0 }
   0xb   : > { %p1142_p8 = por %p151_p5, %p150_p3  ;;  %p194_p9 = scmp.lt.s32.totalorder %s1064_s20, 3 }
   0xc   : > { %s1148_s28 = scalar_select %p132_p7, %s1052_s17, %s134_s24  }
   0xd   : > { %p195_p10 = pnand %p742_p6, %p194_p9 }
   0xe   : > { %p228_p11 = scmp.lt.s32.totalorder (!%p195_p10), %s1056_s18, 1  ;;  %v241_v0 = vld [vmem:[%s1334_s1] sm:$0xff] (!%p195_p10)  ;;  %vm359_vm0 = vcmask (!%p195_p10), 392192   ;;  %v1066_v1 = vmov (!%p195_p10), 0   ;;  %v265_v3 = vld [vmem:[%s1335_s2 + $0x10] sm:$0xff] (!%p195_p10)  ;;  %v264_v4 = vld [vmem:[%s1335_s2 + $0x8] sm:$0xff] (!%p195_p10) }
   0xf   : > { %198 = sbr.rel (%p195_p10) target bundleno = 519 (0x207), region = 36  ;;  %822 = vmatprep.mubr.msk.f32.mxu0 (!%p195_p10), %vm359_vm0, %v241_v0  ;;  %984 = vset.pattern.permute.xlu0 (!%p195_p10), %v1066_v1  ;;  %v263_v2 = vld [vmem:[%s1335_s2] sm:$0xff] (!%p195_p10)  ;;  %v266_v10 = vld [vmem:[%s1335_s2 + $0x18] sm:$0xff] (!%p195_p10)  ;;  %v268_v16 = vld [vmem:[%s1335_s2 + $0x28] sm:$0xff] (!%p195_p10)  ;;  %s769_s29 = sshll.u32 (!%p195_p10), %s1056_s18, 8  ;;  %vm630_vm1 = vcmask (!%p195_p10), 523264  }
  0x10   : > { %985 = vset.pattern.permute.xlu1 (!%p195_p10), %v1066_v1  ;;  %281 = vperm.xlu0 (!%p195_p10), %984, %v263_v2   ;;  %v267_v14 = vld [vmem:[%s1335_s2 + $0x20] sm:$0xff] (!%p195_p10)  ;;  %v269_v17 = vld [vmem:[%s1335_s2 + $0x30] sm:$0xff] (!%p195_p10)  ;;  %v270_v18 = vld [vmem:[%s1335_s2 + $0x38] sm:$0xff] (!%p195_p10)  ;;  %s1285_s7 = scalar_lea.hbm (!%p195_p10), %s1337_s4, %s769_s29 }
  0x11   : > { %291 = vperm.xlu1 (!%p195_p10), %985, %v265_v3   ;;  %v242_v19 = vld [vmem:[%s1334_s1 + $0x8] sm:$0xff] (!%p195_p10)  ;;  %v271_v20 = vld [vmem:[%s1335_s2 + $0x40] sm:$0xff] (!%p195_p10)  ;;  %v243_v21 = vld [vmem:[%s1334_s1 + $0x10] sm:$0xff] (!%p195_p10) }
  0x12   : > { %v272_v22 = vld [vmem:[%s1335_s2 + $0x48] sm:$0xff] (!%p195_p10)  ;;  %v244_v23 = vld [vmem:[%s1334_s1 + $0x18] sm:$0xff] (!%p195_p10)  ;;  %v273_v24 = vld [vmem:[%s1335_s2 + $0x50] sm:$0xff] (!%p195_p10) }
  0x13   : > { %v245_v25 = vld [vmem:[%s1334_s1 + $0x20] sm:$0xff] (!%p195_p10)  ;;  %v274_v26 = vld [vmem:[%s1335_s2 + $0x58] sm:$0xff] (!%p195_p10)  ;;  %v246_v27 = vld [vmem:[%s1334_s1 + $0x28] sm:$0xff] (!%p195_p10) }
  0x14   : > { %286 = vperm.xlu0 (!%p195_p10), %984, %v264_v4   ;;  %v275_v28 = vld [vmem:[%s1335_s2 + $0x60] sm:$0xff] (!%p195_p10)  ;;  %v247_v29 = vld [vmem:[%s1334_s1 + $0x30] sm:$0xff] (!%p195_p10)  ;;  %v276_v30 = vld [vmem:[%s1335_s2 + $0x68] sm:$0xff] (!%p195_p10) }
  0x15   : > { %296 = vperm.xlu1 (!%p195_p10), %985, %v266_v10   ;;  %v248_v31 = vld [vmem:[%s1334_s1 + $0x38] sm:$0xff] (!%p195_p10)  ;;  %v277_v32 = vld [vmem:[%s1335_s2 + $0x70] sm:$0xff] (!%p195_p10)  ;;  %v249_v33 = vld [vmem:[%s1334_s1 + $0x40] sm:$0xff] (!%p195_p10) }
  0x16   : > { %s1156_s5 = scalar_select %p228_p11, %s1056_s18, 1  ;;  %v278_v34 = vld [vmem:[%s1335_s2 + $0x78] sm:$0xff]  ;;  %v250_v35 = vld [vmem:[%s1334_s1 + $0x48] sm:$0xff]  ;;  %v251_v36 = vld [vmem:[%s1334_s1 + $0x50] sm:$0xff] }
  0x17   : > { %v252_v37 = vld [vmem:[%s1334_s1 + $0x58] sm:$0xff]  ;;  %v253_v38 = vld [vmem:[%s1334_s1 + $0x60] sm:$0xff]  ;;  %v254_v39 = vld [vmem:[%s1334_s1 + $0x68] sm:$0xff]  ;;  %s1067_s18 = smov [#allocation2]  }
  0x18   : > { %s925_s6 = smul.u32 48, %s1156_s5  ;;  %301 = vperm.xlu0 %984, %v267_v14   ;;  %v255_v40 = vld [vmem:[%s1334_s1 + $0x70] sm:$0xff]  ;;  %v256_v41 = vld [vmem:[%s1334_s1 + $0x78] sm:$0xff]  ;;  %s768_s12 = sshll.u32 %s1156_s5, 4 }
  0x19   : > { %306 = vperm.xlu1 %985, %v268_v16   ;;  %s1274_s21 = scalar_lea.vmem %s1333_s0, %s768_s12  ;;  %s225_s5 = sand.u32 1, %s1048_s16  }
  0x1a   : > { %s240_s13 = scalar_lea.vmem %s1336_s3, %s925_s6  ;;  %v553_v42 = vld [vmem:[%s1274_s21] sm:$0xff]  ;;  %s743_s22 = sshll.u32 %s225_s5, 4 }
  0x1b   : > { %v257_v5 = vld [vmem:[%s240_s13] sm:$0xff]  ;;  %v258_v6 = vld [vmem:[%s240_s13 + $0x8] sm:$0xff]  ;;  %v259_v7 = vld [vmem:[%s240_s13 + $0x10] sm:$0xff]  ;;  %878 = vmatprep.mubr.f32.mxu1 %v553_v42  ;;  %s227_s24 = scalar_lea.vmem [#allocation2], %s743_s22  ;;  %s1287_s8 = scalar_lea.sflag [#allocation3], %s225_s5 }
  0x1c   : > { %v881_v8 = vpack.c.bf16 %v258_v6, %v257_v5  ;;  %v260_v9 = vld [vmem:[%s240_s13 + $0x18] sm:$0xff]  ;;  %v261_v12 = vld [vmem:[%s240_s13 + $0x20] sm:$0xff]  ;;  %v262_v13 = vld [vmem:[%s240_s13 + $0x28] sm:$0xff]  ;;  %311 = vperm.xlu0 %984, %v269_v17   ;;  %s648_s26 = sshll.u32 %s227_s24, 4  ;;  %s990_s10 = sshll.u32 %s1067_s18, 4  ;;  %s1280_s26 = int_to_ptr.vmem [resolvable:$true] %s648_s26  ;;  %s991_s10 = int_to_ptr.vmem [resolvable:$false] %s990_s10 }
  0x1d   : > { %v885_v11 = vpack.c.bf16 %v260_v9, %v259_v7  ;;  %v889_v15 = vpack.c.bf16 %v262_v13, %v261_v12  ;;  %316 = vperm.xlu1 %985, %v270_v18   ;;  %s986_s9 = scalar_lea.vmem %s1280_s26, 256  ;;  %s992_s11 = scalar_lea.vmem %s991_s10, 512 }
  0x1e   : > { %882 = vmatprep.subr.bf16.mxu0 %v881_v8  ;;  %p987_p12 = scmp.ne.s32.totalorder %s1280_s26, %s986_s9  ;;  %p993_p1 = scmp.lt.s32.totalorder %s1280_s26, %s991_s10 }
  0x1f   : > { %884 = vmatpush3.bf16.msra.mxu0 %v881_v8  ;;  %p994_p2 = scmp.lt.s32.totalorder %s992_s11, %s986_s9 }
  0x20   : > { %886 = vmatprep.subr.bf16.mxu0 %v885_v11  ;;  %321 = vperm.xlu0 %984, %v271_v20   ;;  %p988_p13 = pnand %p987_p12, %p1135_p4 }
  0x21   : > { %326 = vperm.xlu1 %985, %v272_v22   ;;  %p995_p3 = por %p994_p2, %p993_p1 }
  0x22   : > { %p989_p0 = pneg %p988_p13 }
  0x23   : > { %888 = vmatpush3.bf16.msra.mxu0 %v885_v11 }
  0x24   : > { %890 = vmatprep.subr.bf16.mxu0 %v889_v15  ;;  %331 = vperm.xlu0 %984, %v273_v24   ;;  %p996_p5 = pnand %p995_p3, %p989_p0 }
  0x25   : > { %336 = vperm.xlu1 %985, %v274_v26  }
  0x27   : > { %892 = vmatpush3.bf16.msra.mxu0 %v889_v15 }
  0x28   : > { %341 = vperm.xlu0 %984, %v275_v28  }
  0x29   : > { %346 = vperm.xlu1 %985, %v276_v30  }
  0x2a   : > { %823 = vmatmul.mubr.msk.f32.vlgmr.msra.gmra.mrb[0].mxu0 %vm359_vm0, %v242_v19 }
  0x2b   : > { %825 = vmatprep.mubr.msk.f32.mxu0 %vm359_vm0, %v243_v21 }
  0x2c   : > { %351 = vperm.xlu0 %984, %v277_v32  }
  0x2d   : > { %356 = vperm.xlu1 %985, %v278_v34  }
  0x2e   : > { %826 = vmatmul.mubr.msk.f32.gmra.mrb[2].mxu0 %vm359_vm0, %v244_v23 }
  0x2f   : > { %828 = vmatprep.mubr.msk.f32.mxu0 %vm359_vm0, %v245_v25 }
  0x32   : > { %829 = vmatmul.mubr.msk.f32.gmra.mrb[4].mxu0 %vm359_vm0, %v246_v27 }
  0x33   : > { %831 = vmatprep.mubr.msk.f32.mxu0 %vm359_vm0, %v247_v29 }
  0x36   : > { %832 = vmatmul.mubr.msk.f32.gmra.mrb[6].mxu0 %vm359_vm0, %v248_v31 }
  0x37   : > { %834 = vmatprep.mubr.msk.f32.mxu0 %vm359_vm0, %v249_v33 }
  0x3a   : > { %835 = vmatmul.mubr.msk.f32.gmra.mrb[8].mxu0 %vm359_vm0, %v250_v35  ;;  %v554_v35 = vld [vmem:[%s1274_s21 + $0x8] sm:$0xff] }
  0x3b   : > { %837 = vmatprep.mubr.msk.f32.mxu0 %vm359_vm0, %v251_v36 }
  0x3e   : > { %838 = vmatmul.mubr.msk.f32.gmra.mrb[10].mxu0 %vm359_vm0, %v252_v37 }
  0x3f   : > { %840 = vmatprep.mubr.msk.f32.mxu0 %vm359_vm0, %v253_v38 }
  0x42   : > { %841 = vmatmul.mubr.msk.f32.gmra.mrb[12].mxu0 %vm359_vm0, %v254_v39 }
  0x43   : > { %843 = vmatprep.mubr.msk.f32.mxu0 %vm359_vm0, %v255_v40 }
  0x46   : > { %844 = vmatmul.mubr.msk.f32.gmra.mrb[14].mxu0 %vm359_vm0, %v256_v41 }
  0x8f   : > { %v282_v44 = vpop.permute.xlu0 %281 }
  0x90   : > { %v292_v43 = vpop.permute.xlu1 %291 }
  0x93   : > { %v287_v46 = vpop.permute.xlu0 %286 }
  0x94   : > { %v297_v45 = vpop.permute.xlu1 %296 }
  0x97   : > { %v302_v48 = vpop.permute.xlu0 %301 }
  0x98   : > { %v307_v47 = vpop.permute.xlu1 %306 }
  0x9b   : > { %v312_v56 = vpop.permute.xlu0 %311 }
  0x9c   : > { %v317_v53 = vpop.permute.xlu1 %316 }
  0x9f   : > { %v322_v2 = vpop.permute.xlu0 %321 }
  0xa0   : > { %v327_v0 = vpop.permute.xlu1 %326 }
  0xa3   : > { %v332_v11 = vpop.permute.xlu0 %331 }
  0xa4   : > { %v337_v8 = vpop.permute.xlu1 %336 }
  0xa7   : > { %v342_v21 = vpop.permute.xlu0 %341 }
  0xa8   : > { %v347_v19 = vpop.permute.xlu1 %346 }
  0xab   : > { %v352_v30 = vpop.permute.xlu0 %351 }
  0xac   : > { %v357_v27 = vpop.permute.xlu1 %356 }
  0xfd   : > { %v824_v49 = vpop.f32.mrb[0].mxu0 }
  0xfe   : > { %v480_v50 = vadd.f32 %v824_v49, %v287_v46  ;;  %v474_v51 = vpop.f32.mrb[1].mxu0 }
  0xff   : > { %v475_v52 = vadd.f32 %v474_v51, %v282_v44 }
 0x101   : > { %v827_v54 = vpop.f32.mrb[2].mxu0  ;;  %v893_v55 = vpack.c.bf16 %v480_v50, %v475_v52 }
 0x102   : > { %v490_v57 = vadd.f32 %v827_v54, %v297_v45  ;;  %v484_v58 = vpop.f32.mrb[3].mxu0 }
 0x103   : > { %v485_v59 = vadd.f32 %v484_v58, %v292_v43  ;;  %894 = vmatprep.subr.bf16.mxu1 %v893_v55 }
 0x104   : > { %896 = vmatpush3.bf16.msra.mxu1 %v893_v55 }
 0x105   : > { %v897_v60 = vpack.c.bf16 %v490_v57, %v485_v59  ;;  %v830_v61 = vpop.f32.mrb[4].mxu0 }
 0x106   : > { %v500_v62 = vadd.f32 %v830_v61, %v307_v47  ;;  %v494_v63 = vpop.f32.mrb[5].mxu0 }
 0x107   : > { %v495_v1 = vadd.f32 %v494_v63, %v302_v48  ;;  %898 = vmatprep.subr.bf16.mxu1 %v897_v60 }
 0x108   : > { %900 = vmatpush3.bf16.msra.mxu1 %v897_v60 }
 0x109   : > { %v901_v3 = vpack.c.bf16 %v500_v62, %v495_v1  ;;  %v833_v4 = vpop.f32.mrb[6].mxu0 }
 0x10a   : > { %v510_v5 = vadd.f32 %v833_v4, %v317_v53  ;;  %v504_v6 = vpop.f32.mrb[7].mxu0 }
 0x10b   : > { %v505_v7 = vadd.f32 %v504_v6, %v312_v56  ;;  %902 = vmatprep.subr.bf16.mxu1 %v901_v3 }
 0x10c   : > { %904 = vmatpush3.bf16.msra.mxu1 %v901_v3 }
 0x10d   : > { %v905_v9 = vpack.c.bf16 %v510_v5, %v505_v7  ;;  %v836_v10 = vpop.f32.mrb[8].mxu0 }
 0x10e   : > { %v520_v12 = vadd.f32 %v836_v10, %v327_v0  ;;  %v514_v13 = vpop.f32.mrb[9].mxu0 }
 0x10f   : > { %v515_v14 = vadd.f32 %v514_v13, %v322_v2  ;;  %906 = vmatprep.subr.bf16.mxu1 %v905_v9 }
 0x110   : > { %908 = vmatpush3.bf16.msra.mxu1 %v905_v9 }
 0x111   : > { %v909_v15 = vpack.c.bf16 %v520_v12, %v515_v14  ;;  %v839_v16 = vpop.f32.mrb[10].mxu0 }
 0x112   : > { %v530_v17 = vadd.f32 %v839_v16, %v337_v8  ;;  %v524_v18 = vpop.f32.mrb[11].mxu0 }
 0x113   : > { %v525_v20 = vadd.f32 %v524_v18, %v332_v11  ;;  %910 = vmatprep.subr.bf16.mxu1 %v909_v15 }
 0x114   : > { %912 = vmatpush3.bf16.msra.mxu1 %v909_v15 }
 0x115   : > { %v913_v22 = vpack.c.bf16 %v530_v17, %v525_v20  ;;  %v842_v23 = vpop.f32.mrb[12].mxu0 }
 0x116   : > { %v540_v24 = vadd.f32 %v842_v23, %v347_v19  ;;  %v534_v25 = vpop.f32.mrb[13].mxu0 }
 0x117   : > { %v535_v26 = vadd.f32 %v534_v25, %v342_v21  ;;  %914 = vmatprep.subr.bf16.mxu1 %v913_v22 }
 0x118   : > { %916 = vmatpush3.bf16.msra.mxu1 %v913_v22 }
 0x119   : > { %v917_v28 = vpack.c.bf16 %v540_v24, %v535_v26  ;;  %v845_v29 = vpop.f32.mrb[14].mxu0 }
 0x11a   : > { %v550_v31 = vadd.f32 %v845_v29, %v357_v27  ;;  %v544_v32 = vpop.f32.mrb[15].mxu0 }
 0x11b   : > { %v545_v33 = vadd.f32 %v544_v32, %v352_v30  ;;  %918 = vmatprep.subr.bf16.mxu1 %v917_v28 }
 0x11c   : > { %920 = vmatpush3.bf16.msra.mxu1 %v917_v28 }
 0x11d   : > { %v921_v34 = vpack.c.bf16 %v550_v31, %v545_v33 }
 0x11f   : > { %922 = vmatprep.subr.bf16.mxu1 %v921_v34 }
 0x120   : > { %924 = vmatpush3.bf16.msra.mxu1 %v921_v34 }
 0x123   : > { %879 = vmatmul.mubr.f32.vlgmr.msra.gmra.mrb[0].mxu1 %v554_v35 }
 0x1f6   : > { %v880_v36 = vpop.f32.mrb[0].mxu1 }
 0x1f7   : > { %632 = vst.msk [vmem:[%s227_s24 + $0x8] sm:$0xff] %vm630_vm1, %v880_v36  ;;  %v621_v37 = vpop.f32.mrb[1].mxu1 }
 0x1f8   : > { %631 = vst.msk [vmem:[%s227_s24] sm:$0xff] %vm630_vm1, %v621_v37 }
 0x1f9   : > { %999 = shalt.err (!%p996_p5)
}
 0x1fa   : > { %s1000_s12 = scalar_lea.hbm %s1285_s7, 256  ;;  %s1004_s21 = scalar_lea.hbm %s1337_s4, 512 }
 0x1fb   : > { %p1001_p6 = scmp.ne.s32.totalorder %s1285_s7, %s1000_s12  ;;  %p1005_p10 = scmp.lt.u32.totalorder %s1285_s7, %s1337_s4 }
 0x1fc   : > { %p1006_p11 = scmp.lt.u32.totalorder %s1004_s21, %s1000_s12  ;;  %p1008_p13 = scmp.lt.u32.totalorder %s1000_s12, %s1285_s7 }
 0x1fd   : > { %p1002_p7 = pnand %p1001_p6, %p1135_p4 }
 0x1fe   : > { %p1007_p12 = por %p1006_p11, %p1005_p10 }
 0x1ff   : > { %p1003_p9 = pneg %p1002_p7 }
 0x200   : > { %p1009_p0 = por %p1008_p13, %p1007_p12 }
 0x202   : > { %p1010_p1 = pnand %p1009_p0, %p1003_p9 }
 0x204   : > { %1013 = shalt.err (!%p1010_p1)
}
 0x205   : > { %s1068_s24 = smov 128   ;;  %s1069_s29 = smov 8  }
 0x206   : > { %926 = dma.vmem_to_hbm [thread:$0]  (%p1135_p4), %s1280_s26, 256, %s1285_s7, %s1287_s8, %s1068_s24, %s1068_s24, %s1069_s29  }
 0x207 PF: > { %p932_p2 = scmp.ge.s32.totalorder %s1064_s20, 2  ;;  %s663_s30 = sand.u32 1, %s1044_s15  }
 0x208   : > { %s664_s6 = scalar_lea.sflag [#allocation3], %s663_s30 }
 0x209   : > { %p929_p3 = pnand %p932_p2, %p1142_p8 }
 0x20b   : > { %1039 = dma.done.wait (!%p929_p3), %s664_s6, 256  }
 0x20c   : > { %1041 = vsyncadd (!%p929_p3), %s664_s6, 4294967040  ;;  %s17_s20 = sadd.s32 1, %s1064_s20   ;;  %s1340_s15 = smov %s1048_s16 }
 0x20d   : > { %p14_p5 = scmp.ge.s32.totalorder %s17_s20, 4   ;;  %s1341_s16 = smov %s1052_s17 }
 0x20e   : > { %s1342_s17 = smov %s1148_s28  ;;  %s1343_s18 = smov %s1060_s19 }
 0x20f   : > { %s1344_s19 = smov %s1346_s23  ;;  %16 = sbr.rel (!%p14_p5) target bundleno = 4 (0x4), region = 74 }
 0x216   :  { %669 = vsyncpa [#allocation3], 1 }
 0x217   :  { %671 = vsyncpa [#allocation3 + $0x1], 1 }

</bundles_post_ra>
